<compile_context>
chip_gen: v5e
topology: v5e:2x2
jax: 0.10.0
libtpu: 0.0.40
codegen_flags: <defaults>
</compile_context>

<pallas_src>
import math
import numpy as np
import jax
import jax.numpy as jnp
from jax.experimental import pallas as pl
from jax.experimental.pallas import tpu as pltpu


def _round_up(v, m):
    return ((v + m - 1) // m) * m


# ----- Pass 1: H = relu(X @ W), computed once (hoisted out of the aggregation grid) -----
def feat_kernel(x_ref, w_ref, h_ref):
    h = jnp.dot(x_ref[...], w_ref[...], preferred_element_type=jnp.float32)
    h_ref[...] = jnp.maximum(h, 0.0).astype(h_ref.dtype)


# ----- Pass 2: out = (A_counts @ H) * inv_deg, tiled over (row tiles, K tiles) -----
def agg_kernel(a_ref, h_ref, inv_deg_ref, o_ref):
    k = pl.program_id(1)

    @pl.when(k == 0)
    def _():
        o_ref[...] = jnp.zeros_like(o_ref)

    # int8 exact counts -> bf16 MXU operand (VPU cast is slack filler under the
    # MXU/DMA-bound loop); accumulate directly into the resident f32 output block.
    a = a_ref[...].astype(jnp.float32).astype(jnp.bfloat16)
    o_ref[...] += jnp.dot(a, h_ref[...], preferred_element_type=jnp.float32)

    @pl.when(k == pl.num_programs(1) - 1)
    def _():
        # scatter_mean's 1/deg applied exactly in f32 (no bf16 quantization of 1/deg).
        o_ref[...] = o_ref[...] * inv_deg_ref[...]


def sage_conv_mean(x, weight, a_counts, inv_deg, *, tile_m=512, tile_k=512):
    """x: [N, C_in] f32, weight: [C_in, C_out] f32,
    a_counts: [N, N] int8 edge-count adjacency (self loops added, self dupes removed),
    inv_deg: [N, 1] f32 reciprocal in-degree. Returns [N, C_out] f32."""
    N, C_in = x.shape
    C_in_w, C_out = weight.shape
    assert C_in == C_in_w and a_counts.shape == (N, N) and inv_deg.shape == (N, 1)

    c_in_p = _round_up(C_in, 8)
    c_out_p = _round_up(C_out, 128)          # lane-dense output / full MXU result tiles
    n_pm = _round_up(N, tile_m)              # padded rows of A / output
    n_pk = _round_up(N, tile_k)              # padded cols of A / rows of H

    # Zero padding is inert: padded x rows -> H rows = 0, padded A rows/cols -> 0 output,
    # padded inv_deg rows = 0 so padded output rows stay 0 (and get sliced off anyway).
    x_p = jnp.pad(x, ((0, n_pk - N), (0, c_in_p - C_in))).astype(jnp.bfloat16)
    w_p = jnp.pad(weight, ((0, c_in_p - C_in), (0, c_out_p - C_out))).astype(jnp.bfloat16)
    a_p = jnp.pad(a_counts, ((0, n_pm - N), (0, n_pk - N)))          # stays int8
    d_p = jnp.pad(inv_deg, ((0, n_pm - N), (0, 0))).astype(jnp.float32)

    grid_h = n_pk // tile_k
    grid_m = n_pm // tile_m                  # NOTE: keep >= 2 on v7x for real shapes so the
    grid_k = n_pk // tile_k                  # row axis shards across both TensorCores.

    # --- Pass 1: feature transform (once; no longer recomputed per row tile) ---
    feat_cost = pl.CostEstimate(
        flops=int(2 * n_pk * c_in_p * c_out_p),
        transcendentals=0,
        bytes_accessed=int(x_p.size * 2 + w_p.size * 2 + n_pk * c_out_p * 2),
    )
    h_p = pl.pallas_call(
        feat_kernel,
        out_shape=jax.ShapeDtypeStruct((n_pk, c_out_p), jnp.bfloat16),
        grid_spec=pltpu.PrefetchScalarGridSpec(
            num_scalar_prefetch=0,
            grid=(grid_h,),
            in_specs=[
                pl.BlockSpec((tile_k, c_in_p), lambda i: (i, 0)),      # x row tile
                pl.BlockSpec((c_in_p, c_out_p), lambda i: (0, 0)),     # W resident
            ],
            out_specs=pl.BlockSpec((tile_k, c_out_p), lambda i: (i, 0)),
        ),
        compiler_params=pltpu.CompilerParams(
            dimension_semantics=("parallel",),
            vmem_limit_bytes=32 * 1024 * 1024,
        ),
        cost_estimate=feat_cost,
    )(x_p, w_p)

    # --- Pass 2: aggregation (HBM-bound on the int8 A stream) ---
    agg_cost = pl.CostEstimate(
        flops=int(2 * n_pm * n_pk * c_out_p),
        transcendentals=0,
        bytes_accessed=int(a_p.size * 1                      # int8 A (dominant stream)
                           + grid_m * n_pk * c_out_p * 2     # H re-read per row tile
                           + n_pm * c_out_p * 4              # f32 output
                           + n_pm * 4),                      # inv_deg
    )
    out_p = pl.pallas_call(
        agg_kernel,
        out_shape=jax.ShapeDtypeStruct((n_pm, c_out_p), jnp.float32),
        grid_spec=pltpu.PrefetchScalarGridSpec(
            num_scalar_prefetch=0,
            grid=(grid_m, grid_k),
            in_specs=[
                pl.BlockSpec((tile_m, tile_k), lambda i, k: (i, k)),     # A int8 tile
                pl.BlockSpec((tile_k, c_out_p), lambda i, k: (k, 0)),    # H tile
                pl.BlockSpec((tile_m, 1), lambda i, k: (i, 0)),          # 1/deg column (f32)
            ],
            out_specs=pl.BlockSpec((tile_m, c_out_p), lambda i, k: (i, 0)),
        ),
        compiler_params=pltpu.CompilerParams(
            dimension_semantics=("parallel", "arbitrary"),
            vmem_limit_bytes=32 * 1024 * 1024,
        ),
        cost_estimate=agg_cost,
    )(a_p, h_p, d_p)

    return out_p[:N, :C_out]


def build_adjacency_counts(edge_index_np, num_nodes):
    """remove_self_loops + add_self_loops, densify to exact integer counts + degree."""
    row, col = edge_index_np[0], edge_index_np[1]
    mask = row != col
    row, col = row[mask], col[mask]                      # remove_self_loops
    loop = np.arange(num_nodes, dtype=row.dtype)
    row = np.concatenate([row, loop])                    # add_self_loops
    col = np.concatenate([col, loop])
    A = np.zeros((num_nodes, num_nodes), dtype=np.float32)
    np.add.at(A, (row, col), 1.0)                        # count duplicate edges like scatter does
    deg = A.sum(axis=1, keepdims=True)                   # self loop guarantees deg >= 1
    return A, deg


if __name__ == "__main__":
    key = jax.random.PRNGKey(0)
    k_x, k_w, k_e = jax.random.split(key, 3)

    N = 16            # num nodes
    C_in = 8          # in_channels
    C_out = 32        # out_channels
    E = 40            # num raw edges

    x = jax.random.normal(k_x, (N, C_in), dtype=jnp.float32)
    stdv = 1.0 / math.sqrt(C_in)
    weight = jax.random.uniform(k_w, (C_in, C_out), dtype=jnp.float32,
                                minval=-stdv, maxval=stdv)
    edge_index = np.asarray(
        jax.random.randint(k_e, (2, E), minval=0, maxval=N, dtype=jnp.int32))

    A_counts_np, deg_np = build_adjacency_counts(edge_index, N)
    # TODO(synk): widen the count dtype for multigraphs with >127 duplicate edges per pair.
    assert A_counts_np.max() <= 127
    inv_deg_np = (1.0 / deg_np).astype(np.float32)

    out = sage_conv_mean(
        x, weight,
        jnp.asarray(A_counts_np.astype(np.int8)),
        jnp.asarray(inv_deg_np),
    )
    out = jax.block_until_ready(out)
    out_np = np.asarray(out)

    # --- Reference 1: same bf16 quantization as the kernel (tight check) ---
    def q(a):
        return np.asarray(jnp.asarray(a, jnp.bfloat16).astype(jnp.float32))

    h_q = q(np.maximum(q(np.asarray(x)) @ q(np.asarray(weight)), 0.0))
    ref_q = (A_counts_np @ h_q) * inv_deg_np
    np.testing.assert_allclose(out_np, ref_q, rtol=2e-3, atol=2e-3)

    # --- Reference 2: pure-f32 SAGEConv semantics (loose sanity check) ---
    h32 = np.maximum(np.asarray(x) @ np.asarray(weight), 0.0)
    ref32 = (A_counts_np @ h32) * inv_deg_np
    np.testing.assert_allclose(out_np, ref32, rtol=5e-2, atol=5e-2)

    print("KERNEL_OK")
</pallas_src>

<mosaic_0001>
module attributes {stable_mosaic.version = 11 : i64} {
  func.func @feat_kernel(%arg0: i32, %arg1: memref<512x8xbf16, #tpu.memory_space<vmem>>, %arg2: memref<8x128xbf16, #tpu.memory_space<vmem>>, %arg3: memref<512x128xbf16, #tpu.memory_space<vmem>>) attributes {dimension_semantics = [#tpu.dimension_semantics<parallel>], iteration_bounds = array<i64: 1>, scalar_prefetch = 0 : i64, scratch_operands = 0 : i64, tpu.core_type = #tpu.core_type<tc>, window_params = [{transform_indices = @transform_0, window_bounds = array<i64: 512, 8>}, {pipeline_mode = #tpu.pipeline_mode<synchronous>, transform_indices = @transform_1, window_bounds = array<i64: 8, 128>}, {transform_indices = @transform_2, window_bounds = array<i64: 512, 128>}]} {
    %c0 = arith.constant 0 : index
    %c0_0 = arith.constant 0 : index
    %0 = vector.load %arg1[%c0, %c0_0] : memref<512x8xbf16, #tpu.memory_space<vmem>>, vector<512x8xbf16>
    %c0_1 = arith.constant 0 : index
    %c0_2 = arith.constant 0 : index
    %1 = vector.load %arg2[%c0_1, %c0_2] : memref<8x128xbf16, #tpu.memory_space<vmem>>, vector<8x128xbf16>
    %cst = arith.constant dense<0.000000e+00> : vector<512x128xf32>
    %2 = tpu.matmul %0, %1, %cst {dimension_numbers = #tpu.dot_dimension_numbers<[1], [0], [0], [1], [0, 0, 1, 1], [], []>} : vector<512x8xbf16>, vector<8x128xbf16>, vector<512x128xf32> -> vector<512x128xf32>
    %cst_3 = arith.constant 0.000000e+00 : f32
    %3 = vector.broadcast %cst_3 : f32 to vector<512x128xf32>
    %4 = arith.maximumf %2, %3 : vector<512x128xf32>
    %5 = arith.truncf %4 : vector<512x128xf32> to vector<512x128xbf16>
    %c0_4 = arith.constant 0 : index
    %c0_5 = arith.constant 0 : index
    %6 = vector.load %arg3[%c0_4, %c0_5] : memref<512x128xbf16, #tpu.memory_space<vmem>>, vector<512x128xbf16>
    tpu.vector_store %arg3[%c0_4, %c0_5], %5 {strides = array<i32>} : memref<512x128xbf16, #tpu.memory_space<vmem>>, vector<512x128xbf16>,
    return
  }
  func.func @transform_0(%arg0: i32) -> (i32, i32) {
    %c0_i32 = arith.constant 0 : i32
    %c0_i32_0 = arith.constant 0 : i32
    return %arg0, %c0_i32 : i32, i32
  }
  func.func @transform_1(%arg0: i32) -> (i32, i32) {
    %c0_i32 = arith.constant 0 : i32
    %c0_i32_0 = arith.constant 0 : i32
    %c0_i32_1 = arith.constant 0 : i32
    return %c0_i32, %c0_i32_0 : i32, i32
  }
  func.func @transform_2(%arg0: i32) -> (i32, i32) {
    %c0_i32 = arith.constant 0 : i32
    %c0_i32_0 = arith.constant 0 : i32
    return %arg0, %c0_i32 : i32, i32
  }
}

</mosaic_0001>

<bundles_post_ra>
// kernel: tpu_custom_call.1
= control target key start
LH: loop header
LB: loop body
LE: loop exit
PB: predicated region body
PF: predicated region fallthrough
CT: control target
= control target key end

     0   :  { %vm335_vm0 = vcmask 1043456   ;;  %vm238_vm1 = vcmask 64512   ;;  %s1285_s0 = inlined_call_operand.vmem [shape: bf16[512,8], index: 0, kind: input, shape index: {}]   ;;  %s1286_s1 = inlined_call_operand.vmem [shape: bf16[8,128], index: 1, kind: input, shape index: {}]   ;;  %s1287_s2 = inlined_call_operand.hbm [shape: bf16[512,128], index: 2, kind: output, shape index: {}]  }
   0x1   :  { %v77_v0 = vld [vmem:[%s1286_s1] sm:$0xf] }
   0x2   :  { %v337_v1 = vsel %vm335_vm0, %v77_v0, 0  ;;  %v878_v2 = vld [vmem:[%s1285_s0] sm:$0xff] }
   0x3   :  { %v886_v3 = vld [vmem:[%s1285_s0 + $0x40] sm:$0xff]  ;;  %346 = vmatpush.bf16.msra.mxu0 %v337_v1  ;;  %1101 = vmatpush.bf16.msra.mxu1 %v337_v1 }
   0x4   :  { %v894_v4 = vld [vmem:[%s1285_s0 + $0x80] sm:$0xff]  ;;  %1102 = vmatpush.bf16.msra.mxu2 %v337_v1  ;;  %1103 = vmatpush.bf16.msra.mxu3 %v337_v1 }
   0x5   :  { %v902_v5 = vld [vmem:[%s1285_s0 + $0xc0] sm:$0xff] }
   0x6   :  { %7 = vsyncpa [#allocation3], 0  ;;  %846 = vmatmul.msk.bf16.vlgmr.msra.gmra.mxu0 %vm238_vm1, %v878_v2  ;;  %854 = vmatmul.msk.bf16.vlgmr.msra.gmra.mxu1 %vm238_vm1, %v886_v3  ;;  %v879_v6 = vld [vmem:[%s1285_s0 + $0x8] sm:$0xff]  ;;  %v880_v10 = vld [vmem:[%s1285_s0 + $0x10] sm:$0xff]  ;;  %s706_s19 = sshll.u32 %s1287_s2, 4  ;;  %s1134_s20 = smov 64   ;;  %s707_s19 = int_to_ptr.hbm [resolvable:$true] %s706_s19 }
   0x7   :  { %862 = vmatmul.msk.bf16.vlgmr.msra.gmra.mxu2 %vm238_vm1, %v894_v4  ;;  %870 = vmatmul.msk.bf16.vlgmr.msra.gmra.mxu3 %vm238_vm1, %v902_v5  ;;  %v887_v7 = vld [vmem:[%s1285_s0 + $0x48] sm:$0xff]  ;;  %v888_v11 = vld [vmem:[%s1285_s0 + $0x50] sm:$0xff]  ;;  %v881_v14 = vld [vmem:[%s1285_s0 + $0x18] sm:$0xff]  ;;  %s1135_s21 = smov 4  }
   0x8   :  { %v895_v8 = vld [vmem:[%s1285_s0 + $0x88] sm:$0xff]  ;;  %v896_v12 = vld [vmem:[%s1285_s0 + $0x90] sm:$0xff]  ;;  %v889_v15 = vld [vmem:[%s1285_s0 + $0x58] sm:$0xff] }
   0x9   :  { %v903_v9 = vld [vmem:[%s1285_s0 + $0xc8] sm:$0xff]  ;;  %v904_v13 = vld [vmem:[%s1285_s0 + $0xd0] sm:$0xff]  ;;  %v897_v16 = vld [vmem:[%s1285_s0 + $0x98] sm:$0xff] }
   0xa   :  { %v905_v17 = vld [vmem:[%s1285_s0 + $0xd8] sm:$0xff]  ;;  %v882_v18 = vld [vmem:[%s1285_s0 + $0x20] sm:$0xff]  ;;  %v883_v22 = vld [vmem:[%s1285_s0 + $0x28] sm:$0xff] }
   0xb   :  { %v890_v19 = vld [vmem:[%s1285_s0 + $0x60] sm:$0xff]  ;;  %v891_v23 = vld [vmem:[%s1285_s0 + $0x68] sm:$0xff]  ;;  %v884_v26 = vld [vmem:[%s1285_s0 + $0x30] sm:$0xff] }
   0xc   :  { %v898_v20 = vld [vmem:[%s1285_s0 + $0xa0] sm:$0xff]  ;;  %v899_v24 = vld [vmem:[%s1285_s0 + $0xa8] sm:$0xff]  ;;  %v892_v27 = vld [vmem:[%s1285_s0 + $0x70] sm:$0xff] }
   0xd   :  { %v906_v21 = vld [vmem:[%s1285_s0 + $0xe0] sm:$0xff]  ;;  %v907_v25 = vld [vmem:[%s1285_s0 + $0xe8] sm:$0xff]  ;;  %v900_v28 = vld [vmem:[%s1285_s0 + $0xb0] sm:$0xff] }
   0xe   :  { %v908_v29 = vld [vmem:[%s1285_s0 + $0xf0] sm:$0xff]  ;;  %v885_v30 = vld [vmem:[%s1285_s0 + $0x38] sm:$0xff] }
   0xf   :  { %v893_v31 = vld [vmem:[%s1285_s0 + $0x78] sm:$0xff] }
  0x10   :  { %v901_v32 = vld [vmem:[%s1285_s0 + $0xb8] sm:$0xff] }
  0x11   :  { %v909_v33 = vld [vmem:[%s1285_s0 + $0xf8] sm:$0xff]  ;;  %s1133_s0 = smov [#allocation2]  }
  0x12   :  { %s704_s17 = sshll.u32 %s1133_s0, 4  ;;  %s705_s17 = int_to_ptr.vmem [resolvable:$true] %s704_s17 }
  0x16   :  { %847 = vmatmul.msk.bf16.gmra.mxu0 %vm238_vm1, %v879_v6  ;;  %855 = vmatmul.msk.bf16.gmra.mxu1 %vm238_vm1, %v887_v7 }
  0x17   :  { %863 = vmatmul.msk.bf16.gmra.mxu2 %vm238_vm1, %v895_v8  ;;  %871 = vmatmul.msk.bf16.gmra.mxu3 %vm238_vm1, %v903_v9 }
  0x26   :  { %848 = vmatmul.msk.bf16.gmra.mxu0 %vm238_vm1, %v880_v10  ;;  %856 = vmatmul.msk.bf16.gmra.mxu1 %vm238_vm1, %v888_v11 }
  0x27   :  { %864 = vmatmul.msk.bf16.gmra.mxu2 %vm238_vm1, %v896_v12  ;;  %872 = vmatmul.msk.bf16.gmra.mxu3 %vm238_vm1, %v904_v13 }
  0x36   :  { %849 = vmatmul.msk.bf16.gmra.mxu0 %vm238_vm1, %v881_v14  ;;  %857 = vmatmul.msk.bf16.gmra.mxu1 %vm238_vm1, %v889_v15 }
  0x37   :  { %865 = vmatmul.msk.bf16.gmra.mxu2 %vm238_vm1, %v897_v16  ;;  %873 = vmatmul.msk.bf16.gmra.mxu3 %vm238_vm1, %v905_v17 }
  0x46   :  { %850 = vmatmul.msk.bf16.gmra.mxu0 %vm238_vm1, %v882_v18  ;;  %858 = vmatmul.msk.bf16.gmra.mxu1 %vm238_vm1, %v890_v19 }
  0x47   :  { %866 = vmatmul.msk.bf16.gmra.mxu2 %vm238_vm1, %v898_v20  ;;  %874 = vmatmul.msk.bf16.gmra.mxu3 %vm238_vm1, %v906_v21 }
  0x56   :  { %851 = vmatmul.msk.bf16.gmra.mxu0 %vm238_vm1, %v883_v22  ;;  %859 = vmatmul.msk.bf16.gmra.mxu1 %vm238_vm1, %v891_v23 }
  0x57   :  { %867 = vmatmul.msk.bf16.gmra.mxu2 %vm238_vm1, %v899_v24  ;;  %875 = vmatmul.msk.bf16.gmra.mxu3 %vm238_vm1, %v907_v25 }
  0x66   :  { %852 = vmatmul.msk.bf16.gmra.mxu0 %vm238_vm1, %v884_v26  ;;  %860 = vmatmul.msk.bf16.gmra.mxu1 %vm238_vm1, %v892_v27 }
  0x67   :  { %868 = vmatmul.msk.bf16.gmra.mxu2 %vm238_vm1, %v900_v28  ;;  %876 = vmatmul.msk.bf16.gmra.mxu3 %vm238_vm1, %v908_v29 }
  0x76   :  { %853 = vmatmul.msk.bf16.gmra.mxu0 %vm238_vm1, %v885_v30  ;;  %861 = vmatmul.msk.bf16.gmra.mxu1 %vm238_vm1, %v893_v31 }
  0x77   :  { %869 = vmatmul.msk.bf16.gmra.mxu2 %vm238_vm1, %v901_v32  ;;  %877 = vmatmul.msk.bf16.gmra.mxu3 %vm238_vm1, %v909_v33 }
  0x83   :  { %v348_v34 = vpop.f32.mrf.mxu0  ;;  %v388_v35 = vpop.f32.mrf.mxu1 }
  0x84   :  { %v508_v40 = vmax.f32 %v348_v34, 0.0  ;;  %v524_v41 = vmax.f32 %v388_v35, 0.0 }
  0x8a   :  { %v428_v36 = vpop.f32.mrf.mxu2  ;;  %v468_v37 = vpop.f32.mrf.mxu3 }
  0x8b   :  { %v350_v38 = vpop.f32.mrf.mxu0  ;;  %v390_v39 = vpop.f32.mrf.mxu1  ;;  %v540_v48 = vmax.f32 %v428_v36, 0.0  ;;  %v556_v49 = vmax.f32 %v468_v37, 0.0 }
  0x8c   :  { %v509_v42 = vmax.f32 %v350_v38, 0.0  ;;  %v525_v43 = vmax.f32 %v390_v39, 0.0 }
  0x8e   :  { %v913_v44 = vpack.c.bf16 %v509_v42, %v508_v40  ;;  %v953_v45 = vpack.c.bf16 %v525_v43, %v524_v41 }
  0x90   :  { %914 = vst [vmem:[#allocation2] sm:$0xff] %v913_v44  }
  0x91   :  { %1077 = vst [vmem:[#allocation2 + $0x40] sm:$0xff] %v953_v45  }
  0x92   :  { %v430_v46 = vpop.f32.mrf.mxu2  ;;  %v470_v47 = vpop.f32.mrf.mxu3 }
  0x93   :  { %v541_v50 = vmax.f32 %v430_v46, 0.0  ;;  %v557_v51 = vmax.f32 %v470_v47, 0.0  ;;  %v353_v52 = vpop.f32.mrf.mxu0  ;;  %v393_v53 = vpop.f32.mrf.mxu1 }
  0x94   :  { %v510_v60 = vmax.f32 %v353_v52, 0.0  ;;  %v526_v61 = vmax.f32 %v393_v53, 0.0 }
  0x95   :  { %v993_v54 = vpack.c.bf16 %v541_v50, %v540_v48  ;;  %v1033_v55 = vpack.c.bf16 %v557_v51, %v556_v49 }
  0x97   :  { %1085 = vst [vmem:[#allocation2 + $0x80] sm:$0xff] %v993_v54  }
  0x98   :  { %1093 = vst [vmem:[#allocation2 + $0xc0] sm:$0xff] %v1033_v55  }
  0x9a   :  { %v433_v56 = vpop.f32.mrf.mxu2  ;;  %v473_v57 = vpop.f32.mrf.mxu3 }
  0x9b   :  { %v355_v58 = vpop.f32.mrf.mxu0  ;;  %v395_v59 = vpop.f32.mrf.mxu1  ;;  %v542_v4 = vmax.f32 %v433_v56, 0.0  ;;  %v558_v5 = vmax.f32 %v473_v57, 0.0 }
  0x9c   :  { %v511_v62 = vmax.f32 %v355_v58, 0.0  ;;  %v527_v63 = vmax.f32 %v395_v59, 0.0 }
  0x9e   :  { %v918_v0 = vpack.c.bf16 %v511_v62, %v510_v60  ;;  %v958_v1 = vpack.c.bf16 %v527_v63, %v526_v61 }
  0xa0   :  { %1070 = vst [vmem:[#allocation2 + $0x8] sm:$0xff] %v918_v0  }
  0xa1   :  { %1078 = vst [vmem:[#allocation2 + $0x48] sm:$0xff] %v958_v1  }
  0xa2   :  { %v435_v2 = vpop.f32.mrf.mxu2  ;;  %v475_v3 = vpop.f32.mrf.mxu3 }
  0xa3   :  { %v543_v6 = vmax.f32 %v435_v2, 0.0  ;;  %v559_v7 = vmax.f32 %v475_v3, 0.0  ;;  %v358_v8 = vpop.f32.mrf.mxu0  ;;  %v398_v9 = vpop.f32.mrf.mxu1 }
  0xa4   :  { %v512_v16 = vmax.f32 %v358_v8, 0.0  ;;  %v528_v17 = vmax.f32 %v398_v9, 0.0 }
  0xa5   :  { %v998_v10 = vpack.c.bf16 %v543_v6, %v542_v4  ;;  %v1038_v11 = vpack.c.bf16 %v559_v7, %v558_v5 }
  0xa7   :  { %1086 = vst [vmem:[#allocation2 + $0x88] sm:$0xff] %v998_v10  }
  0xa8   :  { %1094 = vst [vmem:[#allocation2 + $0xc8] sm:$0xff] %v1038_v11  }
  0xaa   :  { %v438_v12 = vpop.f32.mrf.mxu2  ;;  %v478_v13 = vpop.f32.mrf.mxu3 }
  0xab   :  { %v360_v14 = vpop.f32.mrf.mxu0  ;;  %v400_v15 = vpop.f32.mrf.mxu1  ;;  %v544_v24 = vmax.f32 %v438_v12, 0.0  ;;  %v560_v25 = vmax.f32 %v478_v13, 0.0 }
  0xac   :  { %v513_v18 = vmax.f32 %v360_v14, 0.0  ;;  %v529_v19 = vmax.f32 %v400_v15, 0.0 }
  0xae   :  { %v923_v20 = vpack.c.bf16 %v513_v18, %v512_v16  ;;  %v963_v21 = vpack.c.bf16 %v529_v19, %v528_v17 }
  0xb0   :  { %1071 = vst [vmem:[#allocation2 + $0x10] sm:$0xff] %v923_v20  }
  0xb1   :  { %1079 = vst [vmem:[#allocation2 + $0x50] sm:$0xff] %v963_v21  }
  0xb2   :  { %v440_v22 = vpop.f32.mrf.mxu2  ;;  %v480_v23 = vpop.f32.mrf.mxu3 }
  0xb3   :  { %v545_v26 = vmax.f32 %v440_v22, 0.0  ;;  %v561_v27 = vmax.f32 %v480_v23, 0.0  ;;  %v363_v28 = vpop.f32.mrf.mxu0  ;;  %v403_v29 = vpop.f32.mrf.mxu1 }
  0xb4   :  { %v514_v36 = vmax.f32 %v363_v28, 0.0  ;;  %v530_v37 = vmax.f32 %v403_v29, 0.0 }
  0xb5   :  { %v1003_v30 = vpack.c.bf16 %v545_v26, %v544_v24  ;;  %v1043_v31 = vpack.c.bf16 %v561_v27, %v560_v25 }
  0xb7   :  { %1087 = vst [vmem:[#allocation2 + $0x90] sm:$0xff] %v1003_v30  }
  0xb8   :  { %1095 = vst [vmem:[#allocation2 + $0xd0] sm:$0xff] %v1043_v31  }
  0xba   :  { %v443_v32 = vpop.f32.mrf.mxu2  ;;  %v483_v33 = vpop.f32.mrf.mxu3 }
  0xbb   :  { %v365_v34 = vpop.f32.mrf.mxu0  ;;  %v405_v35 = vpop.f32.mrf.mxu1  ;;  %v546_v44 = vmax.f32 %v443_v32, 0.0  ;;  %v562_v45 = vmax.f32 %v483_v33, 0.0 }
  0xbc   :  { %v515_v38 = vmax.f32 %v365_v34, 0.0  ;;  %v531_v39 = vmax.f32 %v405_v35, 0.0 }
  0xbe   :  { %v928_v40 = vpack.c.bf16 %v515_v38, %v514_v36  ;;  %v968_v41 = vpack.c.bf16 %v531_v39, %v530_v37 }
  0xc0   :  { %1072 = vst [vmem:[#allocation2 + $0x18] sm:$0xff] %v928_v40  }
  0xc1   :  { %1080 = vst [vmem:[#allocation2 + $0x58] sm:$0xff] %v968_v41  }
  0xc2   :  { %v445_v42 = vpop.f32.mrf.mxu2  ;;  %v485_v43 = vpop.f32.mrf.mxu3 }
  0xc3   :  { %v547_v46 = vmax.f32 %v445_v42, 0.0  ;;  %v563_v47 = vmax.f32 %v485_v43, 0.0  ;;  %v368_v48 = vpop.f32.mrf.mxu0  ;;  %v408_v49 = vpop.f32.mrf.mxu1 }
  0xc4   :  { %v516_v56 = vmax.f32 %v368_v48, 0.0  ;;  %v532_v57 = vmax.f32 %v408_v49, 0.0 }
  0xc5   :  { %v1008_v50 = vpack.c.bf16 %v547_v46, %v546_v44  ;;  %v1048_v51 = vpack.c.bf16 %v563_v47, %v562_v45 }
  0xc7   :  { %1088 = vst [vmem:[#allocation2 + $0x98] sm:$0xff] %v1008_v50  }
  0xc8   :  { %1096 = vst [vmem:[#allocation2 + $0xd8] sm:$0xff] %v1048_v51  }
  0xca   :  { %v448_v52 = vpop.f32.mrf.mxu2  ;;  %v488_v53 = vpop.f32.mrf.mxu3 }
  0xcb   :  { %v370_v54 = vpop.f32.mrf.mxu0  ;;  %v410_v55 = vpop.f32.mrf.mxu1  ;;  %v548_v0 = vmax.f32 %v448_v52, 0.0  ;;  %v564_v1 = vmax.f32 %v488_v53, 0.0 }
  0xcc   :  { %v517_v58 = vmax.f32 %v370_v54, 0.0  ;;  %v533_v59 = vmax.f32 %v410_v55, 0.0 }
  0xce   :  { %v933_v60 = vpack.c.bf16 %v517_v58, %v516_v56  ;;  %v973_v61 = vpack.c.bf16 %v533_v59, %v532_v57 }
  0xd0   :  { %1073 = vst [vmem:[#allocation2 + $0x20] sm:$0xff] %v933_v60  }
  0xd1   :  { %1081 = vst [vmem:[#allocation2 + $0x60] sm:$0xff] %v973_v61  }
  0xd2   :  { %v450_v62 = vpop.f32.mrf.mxu2  ;;  %v490_v63 = vpop.f32.mrf.mxu3 }
  0xd3   :  { %v549_v2 = vmax.f32 %v450_v62, 0.0  ;;  %v565_v3 = vmax.f32 %v490_v63, 0.0  ;;  %v373_v4 = vpop.f32.mrf.mxu0  ;;  %v413_v5 = vpop.f32.mrf.mxu1 }
  0xd4   :  { %v518_v12 = vmax.f32 %v373_v4, 0.0  ;;  %v534_v13 = vmax.f32 %v413_v5, 0.0 }
  0xd5   :  { %v1013_v6 = vpack.c.bf16 %v549_v2, %v548_v0  ;;  %v1053_v7 = vpack.c.bf16 %v565_v3, %v564_v1 }
  0xd7   :  { %1089 = vst [vmem:[#allocation2 + $0xa0] sm:$0xff] %v1013_v6  }
  0xd8   :  { %1097 = vst [vmem:[#allocation2 + $0xe0] sm:$0xff] %v1053_v7  }
  0xda   :  { %v453_v8 = vpop.f32.mrf.mxu2  ;;  %v493_v9 = vpop.f32.mrf.mxu3 }
  0xdb   :  { %v375_v10 = vpop.f32.mrf.mxu0  ;;  %v415_v11 = vpop.f32.mrf.mxu1  ;;  %v550_v20 = vmax.f32 %v453_v8, 0.0  ;;  %v566_v21 = vmax.f32 %v493_v9, 0.0 }
  0xdc   :  { %v519_v14 = vmax.f32 %v375_v10, 0.0  ;;  %v535_v15 = vmax.f32 %v415_v11, 0.0 }
  0xde   :  { %v938_v16 = vpack.c.bf16 %v519_v14, %v518_v12  ;;  %v978_v17 = vpack.c.bf16 %v535_v15, %v534_v13 }
  0xe0   :  { %1074 = vst [vmem:[#allocation2 + $0x28] sm:$0xff] %v938_v16  }
  0xe1   :  { %1082 = vst [vmem:[#allocation2 + $0x68] sm:$0xff] %v978_v17  }
  0xe2   :  { %v455_v18 = vpop.f32.mrf.mxu2  ;;  %v495_v19 = vpop.f32.mrf.mxu3 }
  0xe3   :  { %v551_v22 = vmax.f32 %v455_v18, 0.0  ;;  %v567_v23 = vmax.f32 %v495_v19, 0.0  ;;  %v378_v24 = vpop.f32.mrf.mxu0  ;;  %v418_v25 = vpop.f32.mrf.mxu1 }
  0xe4   :  { %v520_v32 = vmax.f32 %v378_v24, 0.0  ;;  %v536_v33 = vmax.f32 %v418_v25, 0.0 }
  0xe5   :  { %v1018_v26 = vpack.c.bf16 %v551_v22, %v550_v20  ;;  %v1058_v27 = vpack.c.bf16 %v567_v23, %v566_v21 }
  0xe7   :  { %1090 = vst [vmem:[#allocation2 + $0xa8] sm:$0xff] %v1018_v26  }
  0xe8   :  { %1098 = vst [vmem:[#allocation2 + $0xe8] sm:$0xff] %v1058_v27  }
  0xea   :  { %v458_v28 = vpop.f32.mrf.mxu2  ;;  %v498_v29 = vpop.f32.mrf.mxu3 }
  0xeb   :  { %v380_v30 = vpop.f32.mrf.mxu0  ;;  %v420_v31 = vpop.f32.mrf.mxu1  ;;  %v552_v40 = vmax.f32 %v458_v28, 0.0  ;;  %v568_v41 = vmax.f32 %v498_v29, 0.0 }
  0xec   :  { %v521_v34 = vmax.f32 %v380_v30, 0.0  ;;  %v537_v35 = vmax.f32 %v420_v31, 0.0 }
  0xee   :  { %v943_v36 = vpack.c.bf16 %v521_v34, %v520_v32  ;;  %v983_v37 = vpack.c.bf16 %v537_v35, %v536_v33 }
  0xf0   :  { %1075 = vst [vmem:[#allocation2 + $0x30] sm:$0xff] %v943_v36  }
  0xf1   :  { %1083 = vst [vmem:[#allocation2 + $0x70] sm:$0xff] %v983_v37  }
  0xf2   :  { %v460_v38 = vpop.f32.mrf.mxu2  ;;  %v500_v39 = vpop.f32.mrf.mxu3 }
  0xf3   :  { %v553_v42 = vmax.f32 %v460_v38, 0.0  ;;  %v569_v43 = vmax.f32 %v500_v39, 0.0  ;;  %v383_v44 = vpop.f32.mrf.mxu0  ;;  %v423_v45 = vpop.f32.mrf.mxu1 }
  0xf4   :  { %v522_v52 = vmax.f32 %v383_v44, 0.0  ;;  %v538_v53 = vmax.f32 %v423_v45, 0.0 }
  0xf5   :  { %v1023_v46 = vpack.c.bf16 %v553_v42, %v552_v40  ;;  %v1063_v47 = vpack.c.bf16 %v569_v43, %v568_v41 }
  0xf7   :  { %1091 = vst [vmem:[#allocation2 + $0xb0] sm:$0xff] %v1023_v46  }
  0xf8   :  { %1099 = vst [vmem:[#allocation2 + $0xf0] sm:$0xff] %v1063_v47  }
  0xfa   :  { %v463_v48 = vpop.f32.mrf.mxu2  ;;  %v503_v49 = vpop.f32.mrf.mxu3 }
  0xfb   :  { %v385_v50 = vpop.f32.mrf.mxu0  ;;  %v425_v51 = vpop.f32.mrf.mxu1  ;;  %v554_v60 = vmax.f32 %v463_v48, 0.0  ;;  %v570_v61 = vmax.f32 %v503_v49, 0.0 }
  0xfc   :  { %v523_v54 = vmax.f32 %v385_v50, 0.0  ;;  %v539_v55 = vmax.f32 %v425_v51, 0.0 }
  0xfe   :  { %v948_v56 = vpack.c.bf16 %v523_v54, %v522_v52  ;;  %v988_v57 = vpack.c.bf16 %v539_v55, %v538_v53 }
 0x100   :  { %1076 = vst [vmem:[#allocation2 + $0x38] sm:$0xff] %v948_v56  }
 0x101   :  { %1084 = vst [vmem:[#allocation2 + $0x78] sm:$0xff] %v988_v57  }
 0x102   :  { %v465_v58 = vpop.f32.mrf.mxu2  ;;  %v505_v59 = vpop.f32.mrf.mxu3 }
 0x103   :  { %v555_v62 = vmax.f32 %v465_v58, 0.0  ;;  %v571_v63 = vmax.f32 %v505_v59, 0.0 }
 0x105   :  { %v1028_v0 = vpack.c.bf16 %v555_v62, %v554_v60  ;;  %v1068_v1 = vpack.c.bf16 %v571_v63, %v570_v61 }
 0x107   :  { %1092 = vst [vmem:[#allocation2 + $0xb8] sm:$0xff] %v1028_v0  }
 0x108   :  { %1100 = vst [vmem:[#allocation2 + $0xf8] sm:$0xff] %v1068_v1  }
 0x109   :  { %712 = dma.vmem_to_hbm [thread:$0]  %s705_s17, 4096, %s707_s19, [#allocation3], %s1134_s20, %s1134_s20, %s1135_s21  }
 0x10a   :  { %1131 = dma.done.wait [#allocation3], 4096  }
 0x10b   :  { %1132 = vsyncadd [#allocation3], 4294963200 }
 0x10c   :  { %717 = vsyncpa [#allocation3], 1 }

</bundles_post_ra>
